<compile_context>
chip_gen: v6e
topology: v6e:2x2x1
jax: 0.10.0
libtpu: 0.0.40
codegen_flags: <defaults>
</compile_context>

<pallas_src>
import functools

import numpy as np
import jax
import jax.numpy as jnp
from jax.experimental import pallas as pl
from jax.experimental.pallas import tpu as pltpu

LANES = 128


def _round_up(x, m):
    return (x + m - 1) // m * m


# --------------------------------------------------------------------------
# configuration (mirrors the module's derived sizes)
# --------------------------------------------------------------------------
def make_config(*, agent_id, n_agent_ori, n_adversary_ori, n_agent, n_adversary,
                hidden_dim, out_dim):
    n_landmark = 2
    ag_obs_len = 2 + 2 + 2 * n_landmark + 4 * (n_agent - 1) + 2 * n_adversary
    ad_obs_len = 2 + 2 + 2 * n_landmark + 2 * (n_adversary - 1) + 4 * n_agent
    ag_act_len = ad_act_len = 2
    input_dim = (ad_obs_len * n_adversary + ag_obs_len * n_agent
                 + ad_act_len * n_adversary + ag_act_len * n_agent)
    K = ad_obs_len + ad_act_len                 # RNN input size per token
    T = n_adversary - 1                         # RNN sequence length
    H = K * (n_adversary_ori - 1)               # RNN hidden size
    agent_w = n_agent * ag_obs_len + ag_act_len * n_agent
    self_w = ad_obs_len + ad_act_len
    # fc1.in_features == input_dim must hold for the module's concat to fit;
    # true when n_adversary == n_adversary_ori.
    assert agent_w + H + self_w == input_dim
    assert T * H <= LANES and hidden_dim <= LANES and input_dim <= LANES
    return dict(agent_id=agent_id, n_agent=n_agent, n_adversary=n_adversary,
                n_agent_ori=n_agent_ori, n_adversary_ori=n_adversary_ori,
                ag_obs_len=ag_obs_len, ad_obs_len=ad_obs_len,
                ag_act_len=ag_act_len, ad_act_len=ad_act_len,
                input_dim=input_dim, K=K, T=T, H=H,
                agent_w=agent_w, self_w=self_w,
                hidden_dim=hidden_dim, out_dim=out_dim,
                in_pad=_round_up(input_dim, LANES),
                out_pad=_round_up(out_dim, LANES))


def split_gather_indices(cfg):
    """Positional column order [agent_X | self_X | oa tok0 | tok1 | ...]
    expressed as indices into the (already shuffled) input — i.e. the
    module's split() folded into a single wrapper-side gather.  agent+self
    are placed contiguously so fc1 needs no concat; oa tokens are contiguous
    so the RNN input projection is one matmul."""
    na, ng = cfg["n_adversary"], cfg["n_agent"]
    aol, gol = cfg["ad_obs_len"], cfg["ag_obs_len"]
    aal, gal = cfg["ad_act_len"], cfg["ag_act_len"]
    aid = cfg["agent_id"]
    total_obs = na * aol + ng * gol
    obs = np.arange(total_obs)
    act = total_obs + np.arange(na * aal + ng * gal)
    agent_obs = obs[na * aol: na * aol + ng * gol]
    agent_act = act[gal * na: gal * na + gal * ng]
    agent_cols = np.concatenate([agent_obs, agent_act])
    self_cols = np.concatenate([obs[aid * aol:(aid + 1) * aol],
                                act[aid * aal:(aid + 1) * aal]])
    oa_cols = []
    for i in range(na):
        if i == aid:
            continue
        oa_cols.append(obs[i * aol:(i + 1) * aol])
        oa_cols.append(act[i * aal:(i + 1) * aal])
    oa_cols = np.concatenate(oa_cols)
    g = np.concatenate([agent_cols, self_cols, oa_cols])
    assert np.array_equal(np.sort(g), np.arange(cfg["input_dim"]))
    return g


# --------------------------------------------------------------------------
# parameter slab packing (one contiguous VMEM operand)
# --------------------------------------------------------------------------
def pack_slab(params, cfg):
    K, H, T = cfg["K"], cfg["H"], cfg["T"]
    Din, Dinp = cfg["input_dim"], cfg["in_pad"]
    Dh, Dop = cfg["hidden_dim"], cfg["out_pad"]
    agent_w, self_w = cfg["agent_w"], cfg["self_w"]
    oa_off = agent_w + self_w

    layout = {}
    r = 0

    def reserve(name, nrows, ncols):
        nonlocal r
        layout[name] = (r, nrows, ncols)
        r = _round_up(r + nrows, 8)        # keep row starts sublane-aligned

    reserve("wih_big", Dinp, T * H)        # full-width block-diagonal W_ih
    reserve("b_rnn_big", 1, T * H)
    reserve("whh", H, H)
    reserve("w1f", Dinp, Dh)               # fc1 rows for agent+self (h rows 0)
    reserve("w1h", H, Dh)                  # fc1 rows for the RNN hidden state
    reserve("b1", 1, Dh)
    reserve("w2", Dh, Dh)
    reserve("b2", 1, Dh)
    reserve("w3", Dh, Dop)
    reserve("b3", 1, Dop)
    R = _round_up(r, 8)

    slab = np.zeros((R, LANES), np.float32)

    def put(name, arr):
        r0, nr, nc = layout[name]
        assert arr.shape == (nr, nc), (name, arr.shape, (nr, nc))
        slab[r0:r0 + nr, :nc] = arr

    # Block-diagonal RNN input projection, embedded at the oa column offsets
    # of the (padded) activation layout, so it consumes the full xn slab
    # without any activation slicing.
    wih = np.asarray(params["wih_t"], np.float32)
    wih_big = np.zeros((Dinp, T * H), np.float32)
    for t in range(T):
        wih_big[oa_off + t * K: oa_off + (t + 1) * K, t * H:(t + 1) * H] = wih
    put("wih_big", wih_big)
    put("b_rnn_big", np.tile(np.asarray(params["b_rnn"], np.float32), (1, T)))
    put("whh", np.asarray(params["whh_t"], np.float32))

    # fc1 weights, re-laid-out for the [agent | self | oa | pad] activation
    # order: w1f takes agent+self rows (zeros elsewhere), w1h takes the rows
    # that multiply the RNN hidden state.
    w1 = np.asarray(params["w1_t"], np.float32)            # [Din, Dh]
    w1f = np.zeros((Dinp, Dh), np.float32)
    w1f[:agent_w, :] = w1[:agent_w, :]                      # agent rows
    w1f[agent_w:agent_w + self_w, :] = w1[agent_w + H:Din, :]   # self rows
    put("w1f", w1f)
    put("w1h", w1[agent_w:agent_w + H, :])
    put("b1", np.asarray(params["b1"], np.float32))
    put("w2", np.asarray(params["w2_t"], np.float32))
    put("b2", np.asarray(params["b2"], np.float32))
    w3p = np.zeros((Dh, Dop), np.float32)
    w3p[:, :cfg["out_dim"]] = np.asarray(params["w3_t"], np.float32)
    b3p = np.zeros((1, Dop), np.float32)
    b3p[:, :cfg["out_dim"]] = np.asarray(params["b3"], np.float32)
    put("w3", w3p)
    put("b3", b3p)
    return jnp.asarray(slab), layout


# --------------------------------------------------------------------------
# kernel
# --------------------------------------------------------------------------
def _critic_adversary_kernel(x_ref, slab_ref, out_ref, *, cfg, layout):
    f32 = jnp.float32
    H, T = cfg["H"], cfg["T"]

    def blk(name):
        r0, nr, nc = layout[name]
        return slab_ref[r0:r0 + nr, 0:nc]          # static slice of the slab

    x = x_ref[...]                                 # [B, in_pad] lane-dense

    # BatchNorm1d, training-mode batch statistics (weight=1, bias=0, eps=1e-5).
    # Padded columns are all-zero -> normalize to exactly 0 and hit only zero
    # weight rows downstream.
    mean = jnp.mean(x, axis=0, keepdims=True)
    var = jnp.mean((x - mean) ** 2, axis=0, keepdims=True)   # biased variance
    xn = (x - mean) * jax.lax.rsqrt(var + 1e-5)

    # rnn_other_adversary: every timestep's input projection + bias in ONE
    # full-width matmul (block-diagonal weight embedded at the oa offsets).
    ih_all = (jnp.dot(xn, blk("wih_big"), preferred_element_type=f32)
              + blk("b_rnn_big"))                  # [B, T*H]

    whh = blk("whh")                               # hoisted out of the loop
    h = jnp.tanh(ih_all[:, :H])                    # h_{-1} = 0 -> no h @ Whh
    for t in range(1, T):                          # serial part: 1 dot + tanh
        h = jnp.tanh(ih_all[:, t * H:(t + 1) * H]
                     + jnp.dot(h, whh, preferred_element_type=f32))

    # fc1 on concat([agent_X, h, self_X]) expressed as two dots (no concat):
    # xn already holds agent_X | self_X contiguously; oa/pad rows of w1f are 0.
    h1 = jnp.maximum(
        jnp.dot(xn, blk("w1f"), preferred_element_type=f32)
        + jnp.dot(h, blk("w1h"), preferred_element_type=f32)
        + blk("b1"), 0.0)
    h2 = jnp.maximum(
        jnp.dot(h1, blk("w2"), preferred_element_type=f32) + blk("b2"), 0.0)
    # out_fn is identity; w3/b3 are zero-padded to a lane-dense 128-wide output
    out_ref[...] = (jnp.dot(h2, blk("w3"), preferred_element_type=f32)
                    + blk("b3"))


def critic_adversary_forward(x, perm, slab, layout, cfg):
    """x: [B, input_dim] float32 raw observations; perm: shuffle permutation."""
    B = x.shape[0]
    # shuffle (glue JAX) composed with the split de-interleave -> one gather,
    # then zero-pad to a lane-dense 128-wide slab.
    col_idx = perm[split_gather_indices(cfg)]
    x_arranged = x[:, col_idx]
    pad = cfg["in_pad"] - cfg["input_dim"]
    if pad:
        x_arranged = jnp.pad(x_arranged, ((0, 0), (0, pad)))

    kernel = functools.partial(_critic_adversary_kernel, cfg=cfg, layout=layout)
    vmem = pl.BlockSpec(memory_space=pltpu.MemorySpace.VMEM)
    out_pad = pl.pallas_call(
        kernel,
        out_shape=jax.ShapeDtypeStruct((B, cfg["out_pad"]), jnp.float32),
        in_specs=[vmem, vmem],
        out_specs=vmem,
    )(x_arranged, slab)
    return out_pad[:, :cfg["out_dim"]]


# --------------------------------------------------------------------------
# synthetic parameters + pure-JAX reference (mirrors the PyTorch forward)
# --------------------------------------------------------------------------
def make_params(key, cfg):
    K, H = cfg["K"], cfg["H"]
    Din, Dh, Do = cfg["input_dim"], cfg["hidden_dim"], cfg["out_dim"]
    ks = jax.random.split(key, 10)

    def u(k, shape, bound):
        return jax.random.uniform(k, shape, jnp.float32, -bound, bound)

    br = 1.0 / float(np.sqrt(H))
    b1v = 1.0 / float(np.sqrt(Din))
    b2v = 1.0 / float(np.sqrt(Dh))
    return dict(
        wih_t=u(ks[0], (K, H), br),                      # W_ih^T
        whh_t=u(ks[1], (H, H), br),                      # W_hh^T
        b_rnn=u(ks[2], (1, H), br) + u(ks[3], (1, H), br),   # b_ih + b_hh
        w1_t=u(ks[4], (Din, Dh), b1v), b1=u(ks[5], (1, Dh), b1v),
        w2_t=u(ks[6], (Dh, Dh), b2v), b2=u(ks[7], (1, Dh), b2v),
        w3_t=u(ks[8], (Dh, Do), b2v), b3=u(ks[9], (1, Do), b2v),
    )


def reference_forward(x, perm, params, cfg):
    xs = x[:, perm]
    mean = jnp.mean(xs, axis=0, keepdims=True)
    var = jnp.mean((xs - mean) ** 2, axis=0, keepdims=True)
    xn = (xs - mean) / jnp.sqrt(var + 1e-5)

    na, ng = cfg["n_adversary"], cfg["n_agent"]
    aol, gol = cfg["ad_obs_len"], cfg["ag_obs_len"]
    aal, gal = cfg["ad_act_len"], cfg["ag_act_len"]
    aid = cfg["agent_id"]
    B = x.shape[0]
    total_obs = na * aol + ng * gol
    X_obs, X_act = xn[:, :total_obs], xn[:, total_obs:]

    agent_obs = X_obs[:, na * aol: na * aol + ng * gol]
    agent_act = X_act[:, gal * na: gal * na + gal * ng]
    agent_X = jnp.concatenate([agent_obs, agent_act], axis=1)

    oth_obs = jnp.concatenate(
        [X_obs[:, :aid * aol], X_obs[:, (aid + 1) * aol: na * aol]], axis=1
    ).reshape(B, na - 1, -1)
    oth_act = jnp.concatenate(
        [X_act[:, :aid * aal], X_act[:, (aid + 1) * aal: na * aal]], axis=1
    ).reshape(B, na - 1, -1)
    oth_X = jnp.concatenate([oth_obs, oth_act], axis=2)          # [B, T, K]

    self_X = jnp.concatenate([X_obs[:, aid * aol:(aid + 1) * aol],
                              X_act[:, aid * aal:(aid + 1) * aal]], axis=1)

    h = jnp.zeros((B, cfg["H"]), jnp.float32)
    for t in range(cfg["T"]):
        h = jnp.tanh(oth_X[:, t, :] @ params["wih_t"]
                     + h @ params["whh_t"] + params["b_rnn"])

    fc_in = jnp.concatenate([agent_X, h, self_X], axis=1)
    h1 = jax.nn.relu(fc_in @ params["w1_t"] + params["b1"])
    h2 = jax.nn.relu(h1 @ params["w2_t"] + params["b2"])
    return h2 @ params["w3_t"] + params["b3"]


if __name__ == "__main__":
    cfg = make_config(agent_id=1, n_agent_ori=2, n_adversary_ori=3,
                      n_agent=2, n_adversary=3, hidden_dim=64, out_dim=1)
    B = 128   # many environments per call: amortizes launch/DMA fixed cost

    root = jax.random.PRNGKey(0)
    k_x, k_perm, k_p = jax.random.split(root, 3)

    x = jax.random.normal(k_x, (B, cfg["input_dim"]), jnp.float32)
    # shuffle=True uses torch.randperm per call; deterministic fixed
    # permutation here (documented semantic deviation, glue JAX).
    perm = jax.random.permutation(k_perm, cfg["input_dim"])

    params = make_params(k_p, cfg)
    slab, layout = pack_slab(params, cfg)

    out = critic_adversary_forward(x, perm, slab, layout, cfg)
    out = jax.block_until_ready(out)

    ref = reference_forward(x, perm, params, cfg)
    assert out.shape == (B, cfg["out_dim"])
    err = float(jnp.max(jnp.abs(out - ref)))
    assert jnp.allclose(out, ref, atol=2e-3, rtol=2e-3), f"mismatch: {err}"

    print("KERNEL_OK")
</pallas_src>

<mosaic_0001>
module attributes {stable_mosaic.version = 11 : i64} {
  func.func @_critic_adversary_kernel(%arg0: memref<128x128xf32, #tpu.memory_space<vmem>>, %arg1: memref<512x128xf32, #tpu.memory_space<vmem>>, %arg2: memref<128x128xf32, #tpu.memory_space<vmem>>) attributes {dimension_semantics = [], scalar_prefetch = 0 : i64, scratch_operands = 0 : i64, tpu.core_type = #tpu.core_type<tc>} {
    %c0 = arith.constant 0 : index
    %c0_0 = arith.constant 0 : index
    %0 = vector.load %arg0[%c0, %c0_0] : memref<128x128xf32, #tpu.memory_space<vmem>>, vector<128x128xf32>
    %cst = arith.constant dense<0.000000e+00> : vector<128xf32>
    %1 = vector.multi_reduction <add>, %0, %cst [0] : vector<128x128xf32> to vector<128xf32>
    %2 = vector.shape_cast %1 : vector<128xf32> to vector<1x128xf32>
    %cst_1 = arith.constant 1.280000e+02 : f32
    %3 = vector.broadcast %cst_1 : f32 to vector<1x128xf32>
    %4 = arith.divf %2, %3 : vector<1x128xf32>
    %5 = vector.broadcast %4 : vector<1x128xf32> to vector<128x128xf32>
    %6 = arith.subf %0, %5 : vector<128x128xf32>
    %7 = arith.mulf %6, %6 : vector<128x128xf32>
    %cst_2 = arith.constant dense<0.000000e+00> : vector<128xf32>
    %8 = vector.multi_reduction <add>, %7, %cst_2 [0] : vector<128x128xf32> to vector<128xf32>
    %9 = vector.shape_cast %8 : vector<128xf32> to vector<1x128xf32>
    %cst_3 = arith.constant 1.280000e+02 : f32
    %10 = vector.broadcast %cst_3 : f32 to vector<1x128xf32>
    %11 = arith.divf %9, %10 : vector<1x128xf32>
    %12 = vector.broadcast %4 : vector<1x128xf32> to vector<128x128xf32>
    %13 = arith.subf %0, %12 : vector<128x128xf32>
    %cst_4 = arith.constant 9.99999974E-6 : f32
    %14 = vector.broadcast %cst_4 : f32 to vector<1x128xf32>
    %15 = arith.addf %11, %14 : vector<1x128xf32>
    %16 = math.rsqrt %15 : vector<1x128xf32>
    %17 = vector.broadcast %16 : vector<1x128xf32> to vector<128x128xf32>
    %18 = arith.mulf %13, %17 : vector<128x128xf32>
    %c0_5 = arith.constant 0 : index
    %c0_6 = arith.constant 0 : index
    %19 = vector.load %arg1[%c0_5, %c0_6] : memref<512x128xf32, #tpu.memory_space<vmem>>, vector<128x88xf32>
    %cst_7 = arith.constant dense<0.000000e+00> : vector<128x88xf32>
    %20 = tpu.matmul %18, %19, %cst_7 {dimension_numbers = #tpu.dot_dimension_numbers<[1], [0], [0], [1], [0, 0, 1, 1], [], []>} : vector<128x128xf32>, vector<128x88xf32>, vector<128x88xf32> -> vector<128x88xf32>
    %c128 = arith.constant 128 : index
    %c0_8 = arith.constant 0 : index
    %21 = vector.load %arg1[%c128, %c0_8] : memref<512x128xf32, #tpu.memory_space<vmem>>, vector<1x88xf32>
    %22 = vector.broadcast %21 : vector<1x88xf32> to vector<128x88xf32>
    %23 = arith.addf %20, %22 : vector<128x88xf32>
    %c136 = arith.constant 136 : index
    %c0_9 = arith.constant 0 : index
    %24 = vector.load %arg1[%c136, %c0_9] : memref<512x128xf32, #tpu.memory_space<vmem>>, vector<44x44xf32>
    %25 = vector.extract_strided_slice %23 {offsets = [0, 0], sizes = [128, 44], strides = [1, 1]} : vector<128x88xf32> to vector<128x44xf32>
    %26 = math.tanh %25 : vector<128x44xf32>
    %27 = vector.extract_strided_slice %23 {offsets = [0, 44], sizes = [128, 44], strides = [1, 1]} : vector<128x88xf32> to vector<128x44xf32>
    %cst_10 = arith.constant dense<0.000000e+00> : vector<128x44xf32>
    %28 = tpu.matmul %26, %24, %cst_10 {dimension_numbers = #tpu.dot_dimension_numbers<[1], [0], [0], [1], [0, 0, 1, 1], [], []>} : vector<128x44xf32>, vector<44x44xf32>, vector<128x44xf32> -> vector<128x44xf32>
    %29 = arith.addf %27, %28 : vector<128x44xf32>
    %30 = math.tanh %29 : vector<128x44xf32>
    %c184 = arith.constant 184 : index
    %c0_11 = arith.constant 0 : index
    %31 = vector.load %arg1[%c184, %c0_11] : memref<512x128xf32, #tpu.memory_space<vmem>>, vector<128x64xf32>
    %cst_12 = arith.constant dense<0.000000e+00> : vector<128x64xf32>
    %32 = tpu.matmul %18, %31, %cst_12 {dimension_numbers = #tpu.dot_dimension_numbers<[1], [0], [0], [1], [0, 0, 1, 1], [], []>} : vector<128x128xf32>, vector<128x64xf32>, vector<128x64xf32> -> vector<128x64xf32>
    %c312 = arith.constant 312 : index
    %c0_13 = arith.constant 0 : index
    %33 = vector.load %arg1[%c312, %c0_13] : memref<512x128xf32, #tpu.memory_space<vmem>>, vector<44x64xf32>
    %cst_14 = arith.constant dense<0.000000e+00> : vector<128x64xf32>
    %34 = tpu.matmul %30, %33, %cst_14 {dimension_numbers = #tpu.dot_dimension_numbers<[1], [0], [0], [1], [0, 0, 1, 1], [], []>} : vector<128x44xf32>, vector<44x64xf32>, vector<128x64xf32> -> vector<128x64xf32>
    %35 = arith.addf %32, %34 : vector<128x64xf32>
    %c360 = arith.constant 360 : index
    %c0_15 = arith.constant 0 : index
    %36 = vector.load %arg1[%c360, %c0_15] : memref<512x128xf32, #tpu.memory_space<vmem>>, vector<1x64xf32>
    %37 = vector.broadcast %36 : vector<1x64xf32> to vector<128x64xf32>
    %38 = arith.addf %35, %37 : vector<128x64xf32>
    %cst_16 = arith.constant 0.000000e+00 : f32
    %39 = vector.broadcast %cst_16 : f32 to vector<128x64xf32>
    %40 = arith.maximumf %38, %39 : vector<128x64xf32>
    %c368 = arith.constant 368 : index
    %c0_17 = arith.constant 0 : index
    %41 = vector.load %arg1[%c368, %c0_17] : memref<512x128xf32, #tpu.memory_space<vmem>>, vector<64x64xf32>
    %cst_18 = arith.constant dense<0.000000e+00> : vector<128x64xf32>
    %42 = tpu.matmul %40, %41, %cst_18 {dimension_numbers = #tpu.dot_dimension_numbers<[1], [0], [0], [1], [0, 0, 1, 1], [], []>} : vector<128x64xf32>, vector<64x64xf32>, vector<128x64xf32> -> vector<128x64xf32>
    %c432 = arith.constant 432 : index
    %c0_19 = arith.constant 0 : index
    %43 = vector.load %arg1[%c432, %c0_19] : memref<512x128xf32, #tpu.memory_space<vmem>>, vector<1x64xf32>
    %44 = vector.broadcast %43 : vector<1x64xf32> to vector<128x64xf32>
    %45 = arith.addf %42, %44 : vector<128x64xf32>
    %cst_20 = arith.constant 0.000000e+00 : f32
    %46 = vector.broadcast %cst_20 : f32 to vector<128x64xf32>
    %47 = arith.maximumf %45, %46 : vector<128x64xf32>
    %c440 = arith.constant 440 : index
    %c0_21 = arith.constant 0 : index
    %48 = vector.load %arg1[%c440, %c0_21] : memref<512x128xf32, #tpu.memory_space<vmem>>, vector<64x128xf32>
    %cst_22 = arith.constant dense<0.000000e+00> : vector<128x128xf32>
    %49 = tpu.matmul %47, %48, %cst_22 {dimension_numbers = #tpu.dot_dimension_numbers<[1], [0], [0], [1], [0, 0, 1, 1], [], []>} : vector<128x64xf32>, vector<64x128xf32>, vector<128x128xf32> -> vector<128x128xf32>
    %c504 = arith.constant 504 : index
    %c0_23 = arith.constant 0 : index
    %50 = vector.load %arg1[%c504, %c0_23] : memref<512x128xf32, #tpu.memory_space<vmem>>, vector<1x128xf32>
    %51 = vector.broadcast %50 : vector<1x128xf32> to vector<128x128xf32>
    %52 = arith.addf %49, %51 : vector<128x128xf32>
    %c0_24 = arith.constant 0 : index
    %c0_25 = arith.constant 0 : index
    %53 = vector.load %arg2[%c0_24, %c0_25] : memref<128x128xf32, #tpu.memory_space<vmem>>, vector<128x128xf32>
    tpu.vector_store %arg2[%c0_24, %c0_25], %52 {strides = array<i32>} : memref<128x128xf32, #tpu.memory_space<vmem>>, vector<128x128xf32>,
    return
  }
}

</mosaic_0001>

<bundles_post_ra>
// kernel: tpu_custom_call.1
= control target key start
LH: loop header
LB: loop body
LE: loop exit
PB: predicated region body
PF: predicated region fallthrough
CT: control target
= control target key end

     0   :  { %7 = vsyncpa [#allocation3], 0  ;;  %s2483_s0 = inlined_call_operand.hbm [shape: f32[128,128], index: 0, kind: input, shape index: {}]   ;;  %s2484_s1 = inlined_call_operand.hbm [shape: f32[512,128], index: 1, kind: input, shape index: {}]   ;;  %s2485_s2 = inlined_call_operand.hbm [shape: f32[128,128], index: 2, kind: output, shape index: {}]  }
   0x1   :  { %8 = vsyncpa [#allocation6], 0 }
   0x2   :  { %9 = vsyncpa [#allocation4], 0  ;;  %s2173_s9 = smov [#allocation2]  }
   0x3   :  { %s15_s10 = sshll.u32 %s2173_s9, 4  ;;  %s16_s10 = int_to_ptr.vmem [resolvable:$true] %s15_s10 }
   0x4   :  { %s2115_s11 = scalar_lea.vmem %s16_s10, 2048  ;;  %p2120_p1 = scmp.lt.s32.totalorder %s16_s10, %s16_s10 }
   0x5   :  { %p2116_p0 = scmp.ne.s32.totalorder %s16_s10, %s2115_s11  ;;  %p2121_p2 = scmp.lt.s32.totalorder %s2115_s11, %s2115_s11 }
   0x7   :  { %p2122_p3 = por %p2121_p2, %p2120_p1 }
   0x9   :  { %p2123_p4 = pnand %p2122_p3, %p2116_p0 }
   0xb   :  { %2126 = shalt.err (!%p2123_p4)
}
   0xc   :  { %s2174_s12 = smov 128   ;;  %s2175_s13 = smov 8  }
   0xd   :  { %21 = dma.hbm_to_vmem [thread:$0]  %s2483_s0, 2048, %s16_s10, [#allocation3], %s2174_s12, %s2174_s12, %s2175_s13  }
   0xe   :  { %s2176_s16 = smov [#allocation5]  }
   0xf   :  { %s27_s17 = sshll.u32 %s2176_s16, 4  ;;  %s28_s17 = int_to_ptr.vmem [resolvable:$true] %s27_s17 }
  0x10   :  { %s2135_s18 = scalar_lea.vmem %s28_s17, 8192  ;;  %p2140_p6 = scmp.lt.s32.totalorder %s28_s17, %s28_s17 }
  0x11   :  { %p2136_p5 = scmp.ne.s32.totalorder %s28_s17, %s2135_s18  ;;  %p2141_p7 = scmp.lt.s32.totalorder %s2135_s18, %s2135_s18 }
  0x13   :  { %p2142_p8 = por %p2141_p7, %p2140_p6 }
  0x15   :  { %p2143_p9 = pnand %p2142_p8, %p2136_p5 }
  0x17   :  { %2146 = shalt.err (!%p2143_p9)
}
  0x18   :  { %33 = dma.hbm_to_vmem [thread:$0]  %s2484_s1, 8192, %s28_s17, [#allocation6], %s2174_s12, %s2174_s12, %s2175_s13  }
  0x19   :  { %2167 = dma.done.wait [#allocation3], 2048  }
  0x1a   :  { %2168 = vsyncadd [#allocation3], 4294965248 }
  0x1b   :  { %2169 = dma.done.wait [#allocation6], 8192  }
  0x1c   :  { %2170 = vsyncadd [#allocation6], 4294959104  ;;  %v166_v0 = vld [vmem:[#allocation5 + $0x78] sm:$0xff]  ;;  %v165_v1 = vld [vmem:[#allocation5 + $0x70] sm:$0xff]  ;;  %vm388_vm0 = vcmask 1043456   ;;  %vm339_vm1 = vcmask 359424  }
  0x1d   :  { %1754 = vmatprep.subr.mxu0 %v166_v0  ;;  %v164_v2 = vld [vmem:[#allocation5 + $0x68] sm:$0xff]  ;;  %v163_v3 = vld [vmem:[#allocation5 + $0x60] sm:$0xff]  ;;  %v162_v6 = vld [vmem:[#allocation5 + $0x58] sm:$0xff]  ;;  %s2177_s0 = smov 44   ;;  %s2178_s1 = smov 84   ;;  %vm1078_vm2 = vcmask 523264  }
  0x1e   :  { %1755 = vmatpush3.msra.mxu0 %v166_v0  ;;  %v2207_v4 = vld [vmem:[#allocation2] sm:$0xff]  ;;  %v2209_v5 = vld [vmem:[#allocation2 + $0x8] sm:$0xff]  ;;  %v2211_v7 = vld [vmem:[#allocation2 + $0x10] sm:$0xff]  ;;  %s2179_s21 = smov [#allocation7]  }
  0x1f   :  { %1756 = vmatprep.subr.mxu0 %v165_v1  ;;  %v56_v8 = vadd.f32 %v2209_v5, %v2207_v4  ;;  %v2215_v9 = vld [vmem:[#allocation2 + $0x18] sm:$0xff]  ;;  %v161_v10 = vld [vmem:[#allocation5 + $0x50] sm:$0xff]  ;;  %v2218_v12 = vld [vmem:[#allocation2 + $0x20] sm:$0xff]  ;;  %s1515_s22 = sshll.u32 %s2179_s21, 4  ;;  %s1516_s22 = int_to_ptr.vmem [resolvable:$true] %s1515_s22 }
  0x20   :  { %1757 = vmatpush3.msra.mxu0 %v165_v1  ;;  %v160_v13 = vld [vmem:[#allocation5 + $0x48] sm:$0xff]  ;;  %v159_v16 = vld [vmem:[#allocation5 + $0x40] sm:$0xff]  ;;  %v2224_v18 = vld [vmem:[#allocation2 + $0x30] sm:$0xff]  ;;  %s2147_s23 = scalar_lea.vmem %s1516_s22, 2048  ;;  %p2152_p11 = scmp.lt.s32.totalorder %s1516_s22, %s1516_s22 }
  0x21   :  { %1758 = vmatprep.subr.mxu0 %v164_v2  ;;  %v57_v11 = vadd.f32 %v56_v8, %v2211_v7  ;;  %v2221_v15 = vld [vmem:[#allocation2 + $0x28] sm:$0xff]  ;;  %v158_v19 = vld [vmem:[#allocation5 + $0x38] sm:$0xff]  ;;  %v157_v22 = vld [vmem:[#allocation5 + $0x30] sm:$0xff]  ;;  %p2148_p10 = scmp.ne.s32.totalorder %s1516_s22, %s2147_s23  ;;  %p2153_p12 = scmp.lt.s32.totalorder %s2147_s23, %s2147_s23 }
  0x22   :  { %1759 = vmatpush3.msra.mxu0 %v164_v2  ;;  %v2227_v21 = vld [vmem:[#allocation2 + $0x38] sm:$0xff]  ;;  %v48_v24 = vld [vmem:[#allocation2 + $0x40] sm:$0xff]  ;;  %v156_v25 = vld [vmem:[#allocation5 + $0x28] sm:$0xff] }
  0x23   :  { %1760 = vmatprep.subr.mxu0 %v163_v3  ;;  %v58_v14 = vadd.f32 %v57_v11, %v2215_v9  ;;  %v49_v27 = vld [vmem:[#allocation2 + $0x48] sm:$0xff]  ;;  %v155_v28 = vld [vmem:[#allocation5 + $0x20] sm:$0xff]  ;;  %v50_v30 = vld [vmem:[#allocation2 + $0x50] sm:$0xff]  ;;  %p2154_p13 = por %p2153_p12, %p2152_p11 }
  0x24   :  { %1761 = vmatpush3.msra.mxu0 %v163_v3  ;;  %v154_v31 = vld [vmem:[#allocation5 + $0x18] sm:$0xff]  ;;  %v153_v34 = vld [vmem:[#allocation5 + $0x10] sm:$0xff]  ;;  %v52_v36 = vld [vmem:[#allocation2 + $0x60] sm:$0xff] }
  0x25   :  { %1762 = vmatprep.subr.mxu0 %v162_v6  ;;  %v59_v17 = vadd.f32 %v58_v14, %v2218_v12  ;;  %v51_v33 = vld [vmem:[#allocation2 + $0x58] sm:$0xff]  ;;  %v152_v37 = vld [vmem:[#allocation5 + $0x8] sm:$0xff]  ;;  %v151_v40 = vld [vmem:[#allocation5] sm:$0xff]  ;;  %p2155_p0 = pnand %p2154_p13, %p2148_p10 }
  0x26   :  { %1763 = vmatpush3.msra.mxu0 %v162_v6  ;;  %v53_v39 = vld [vmem:[#allocation2 + $0x68] sm:$0xff]  ;;  %v54_v42 = vld [vmem:[#allocation2 + $0x70] sm:$0xff]  ;;  %v55_v44 = vld [vmem:[#allocation2 + $0x78] sm:$0xff] }
  0x27   :  { %1764 = vmatprep.subr.mxu0 %v161_v10  ;;  %v60_v20 = vadd.f32 %v59_v17, %v2221_v15 }
  0x28   :  { %1765 = vmatpush3.msra.mxu0 %v161_v10 }
  0x29   :  { %1766 = vmatprep.subr.mxu0 %v160_v13  ;;  %v61_v23 = vadd.f32 %v60_v20, %v2224_v18 }
  0x2a   :  { %1767 = vmatpush3.msra.mxu0 %v160_v13 }
  0x2b   :  { %1768 = vmatprep.subr.mxu0 %v159_v16  ;;  %v62_v26 = vadd.f32 %v61_v23, %v2227_v21 }
  0x2c   :  { %1769 = vmatpush3.msra.mxu0 %v159_v16 }
  0x2d   :  { %1770 = vmatprep.subr.mxu0 %v158_v19  ;;  %v63_v29 = vadd.f32 %v62_v26, %v48_v24 }
  0x2e   :  { %1771 = vmatpush3.msra.mxu0 %v158_v19 }
  0x2f   :  { %1772 = vmatprep.subr.mxu0 %v157_v22  ;;  %v64_v32 = vadd.f32 %v63_v29, %v49_v27 }
  0x30   :  { %1773 = vmatpush3.msra.mxu0 %v157_v22 }
  0x31   :  { %1774 = vmatprep.subr.mxu0 %v156_v25  ;;  %v65_v35 = vadd.f32 %v64_v32, %v50_v30 }
  0x32   :  { %1775 = vmatpush3.msra.mxu0 %v156_v25 }
  0x33   :  { %1776 = vmatprep.subr.mxu0 %v155_v28  ;;  %v66_v38 = vadd.f32 %v65_v35, %v51_v33 }
  0x34   :  { %1777 = vmatpush3.msra.mxu0 %v155_v28 }
  0x35   :  { %1778 = vmatprep.subr.mxu0 %v154_v31  ;;  %v67_v41 = vadd.f32 %v66_v38, %v52_v36 }
  0x36   :  { %1779 = vmatpush3.msra.mxu0 %v154_v31 }
  0x37   :  { %1780 = vmatprep.subr.mxu0 %v153_v34  ;;  %v68_v43 = vadd.f32 %v67_v41, %v53_v39 }
  0x38   :  { %1781 = vmatpush3.msra.mxu0 %v153_v34 }
  0x39   :  { %1782 = vmatprep.subr.mxu0 %v152_v37  ;;  %v69_v45 = vadd.f32 %v68_v43, %v54_v42 }
  0x3a   :  { %1783 = vmatpush3.msra.mxu0 %v152_v37 }
  0x3b   :  { %1784 = vmatprep.subr.mxu0 %v151_v40  ;;  %v70_v46 = vadd.f32 %v69_v45, %v55_v44 }
  0x3c   :  { %1785 = vmatpush3.msra.mxu0 %v151_v40 }
  0x3d   :  { %v71_v47 = vrot.slane %v70_v46, 4 }
  0x3f   :  { %v72_v48 = vadd.f32 %v71_v47, %v70_v46 }
  0x41   :  { %v73_v49 = vrot.slane %v72_v48, 2 }
  0x43   :  { %v74_v50 = vadd.f32 %v73_v49, %v72_v48 }
  0x45   :  { %v75_v51 = vrot.slane %v74_v50, 1 }
  0x47   :  { %v76_v52 = vadd.f32 %v75_v51, %v74_v50 }
  0x49   :  { %v78_v53 = vmul.f32 0.0078125, %v76_v52 }
  0x4b   :  { %v79_v54 = vsub.f32 %v2207_v4, %v78_v53  ;;  %v80_v55 = vsub.f32 %v2209_v5, %v78_v53  ;;  %v81_v56 = vsub.f32 %v2211_v7, %v78_v53  ;;  %v82_v57 = vsub.f32 %v2215_v9, %v78_v53 }
  0x4c   :  { %v83_v60 = vsub.f32 %v2218_v12, %v78_v53  ;;  %v84_v62 = vsub.f32 %v2221_v15, %v78_v53  ;;  %v85_v1 = vsub.f32 %v2224_v18, %v78_v53  ;;  %v86_v4 = vsub.f32 %v2227_v21, %v78_v53 }
  0x4d   :  { %v95_v58 = vmul.f32 %v79_v54, %v79_v54  ;;  %v96_v59 = vmul.f32 %v80_v55, %v80_v55  ;;  %v97_v61 = vmul.f32 %v81_v56, %v81_v56  ;;  %v98_v63 = vmul.f32 %v82_v57, %v82_v57 }
  0x4e   :  { %v99_v2 = vmul.f32 %v83_v60, %v83_v60  ;;  %v100_v5 = vmul.f32 %v84_v62, %v84_v62  ;;  %v87_v7 = vsub.f32 %v48_v24, %v78_v53  ;;  %v101_v8 = vmul.f32 %v85_v1, %v85_v1 }
  0x4f   :  { %v111_v0 = vadd.f32 %v96_v59, %v95_v58  ;;  %v88_v10 = vsub.f32 %v49_v27, %v78_v53  ;;  %v102_v11 = vmul.f32 %v86_v4, %v86_v4  ;;  %v89_v12 = vsub.f32 %v50_v30, %v78_v53 }
  0x50   :  { %v103_v14 = vmul.f32 %v87_v7, %v87_v7  ;;  %v90_v15 = vsub.f32 %v51_v33, %v78_v53  ;;  %v91_v20 = vsub.f32 %v52_v36, %v78_v53  ;;  %v92_v23 = vsub.f32 %v53_v39, %v78_v53 }
  0x51   :  { %v112_v3 = vadd.f32 %v111_v0, %v97_v61  ;;  %v104_v17 = vmul.f32 %v88_v10, %v88_v10  ;;  %v105_v18 = vmul.f32 %v89_v12, %v89_v12  ;;  %v93_v26 = vsub.f32 %v54_v42, %v78_v53  ;;  %v320_v0 = vld [vmem:[#allocation5 + $0xa0] sm:$0xff] }
  0x52   :  { %v106_v25 = vmul.f32 %v90_v15, %v90_v15  ;;  %v107_v28 = vmul.f32 %v91_v20, %v91_v20  ;;  %v94_v29 = vsub.f32 %v55_v44, %v78_v53  ;;  %v108_v31 = vmul.f32 %v92_v23, %v92_v23 }
  0x53   :  { %v113_v6 = vadd.f32 %v112_v3, %v98_v63  ;;  %v109_v32 = vmul.f32 %v93_v26, %v93_v26  ;;  %v321_v63 = vld [vmem:[#allocation5 + $0xa8] sm:$0xff] }
  0x54   :  { %v110_v30 = vmul.f32 %v94_v29, %v94_v29  ;;  %v317_v3 = vld [vmem:[#allocation5 + $0x88] sm:$0xff] }
  0x55   :  { %v114_v9 = vadd.f32 %v113_v6, %v99_v2  ;;  %v318_v2 = vld [vmem:[#allocation5 + $0x90] sm:$0xff] }
  0x57   :  { %v115_v13 = vadd.f32 %v114_v9, %v100_v5 }
  0x59   :  { %v116_v16 = vadd.f32 %v115_v13, %v101_v8 }
  0x5b   :  { %v117_v19 = vadd.f32 %v116_v16, %v102_v11 }
  0x5d   :  { %v118_v22 = vadd.f32 %v117_v19, %v103_v14 }
  0x5f   :  { %v119_v21 = vadd.f32 %v118_v22, %v104_v17 }
  0x61   :  { %v120_v24 = vadd.f32 %v119_v21, %v105_v18 }
  0x63   :  { %v121_v27 = vadd.f32 %v120_v24, %v106_v25 }
  0x65   :  { %v122_v34 = vadd.f32 %v121_v27, %v107_v28 }
  0x67   :  { %v123_v35 = vadd.f32 %v122_v34, %v108_v31 }
  0x69   :  { %v124_v37 = vadd.f32 %v123_v35, %v109_v32 }
  0x6b   :  { %v125_v33 = vadd.f32 %v124_v37, %v110_v30 }
  0x6d   :  { %v126_v38 = vrot.slane %v125_v33, 4 }
  0x6f   :  { %v127_v40 = vadd.f32 %v126_v38, %v125_v33 }
  0x71   :  { %v128_v36 = vrot.slane %v127_v40, 2 }
  0x73   :  { %v129_v41 = vadd.f32 %v128_v36, %v127_v40 }
  0x75   :  { %v130_v43 = vrot.slane %v129_v41, 1 }
  0x77   :  { %v131_v39 = vadd.f32 %v130_v43, %v129_v41 }
  0x79   :  { %v132_v45 = vmul.f32 0.0078125, %v131_v39 }
  0x7b   :  { %v133_v46 = vadd.f32 1e-05, %v132_v45 }
  0x7d   :  { %2041 = vrsqrt.f32 %v133_v46 }
  0x8a   :  { %v2042_v42 = vpop.eup %2041 }
  0x8b   :  { %v135_v47 = vmul.f32 %v2042_v42, %v79_v54  ;;  %v2239_v44 = vmul.f32 %v2042_v42, %v80_v55  ;;  %v2241_v48 = vmul.f32 %v2042_v42, %v81_v56  ;;  %v2244_v49 = vmul.f32 %v2042_v42, %v82_v57 }
  0x8c   :  { %v2247_v50 = vmul.f32 %v2042_v42, %v83_v60  ;;  %v2250_v51 = vmul.f32 %v2042_v42, %v84_v62  ;;  %v2253_v52 = vmul.f32 %v2042_v42, %v85_v1  ;;  %v2256_v53 = vmul.f32 %v2042_v42, %v86_v4  ;;  %v322_v62 = vld [vmem:[#allocation5 + $0xb0] sm:$0xf]  ;;  %v319_v1 = vld [vmem:[#allocation5 + $0x98] sm:$0xff]  ;;  %v1528_v4 = vld [vmem:[#allocation5 + $0x80] ss:$0 sm:$0xff] }
  0x8d   :  { %1786 = vmatprep.mubr.f32.mxu0 %v135_v47  ;;  %v2259_v54 = vmul.f32 %v2042_v42, %v87_v7  ;;  %v2262_v55 = vmul.f32 %v2042_v42, %v88_v10  ;;  %v2265_v56 = vmul.f32 %v2042_v42, %v89_v12  ;;  %v2268_v57 = vmul.f32 %v2042_v42, %v90_v15 }
  0x8e   :  { %1787 = vmatmul.mubr.f32.vlgmr.msra.gmra.mxu0 %v2239_v44  ;;  %v2271_v58 = vmul.f32 %v2042_v42, %v91_v20  ;;  %v2274_v59 = vmul.f32 %v2042_v42, %v92_v23  ;;  %v2277_v60 = vmul.f32 %v2042_v42, %v93_v26  ;;  %v2280_v61 = vmul.f32 %v2042_v42, %v94_v29 }
  0x8f   :  { %1789 = vmatprep.mubr.f32.mxu0 %v2241_v48  ;;  %1810 = vmatprep.subr.msk.mxu1 %vm388_vm0, %v322_v62 }
  0x90   :  { %1811 = vmatpush3.msk.msra.mxu1 %vm388_vm0, %v322_v62 }
  0x91   :  { %1812 = vmatprep.subr.mxu1 %v321_v63 }
  0x92   :  { %1790 = vmatmul.mubr.f32.gmra.mxu0 %v2244_v49  ;;  %1813 = vmatpush3.msra.mxu1 %v321_v63 }
  0x93   :  { %1792 = vmatprep.mubr.f32.mxu0 %v2247_v50  ;;  %1814 = vmatprep.subr.mxu1 %v320_v0 }
  0x94   :  { %1815 = vmatpush3.msra.mxu1 %v320_v0 }
  0x95   :  { %1816 = vmatprep.subr.mxu1 %v319_v1 }
  0x96   :  { %1793 = vmatmul.mubr.f32.gmra.mxu0 %v2250_v51  ;;  %1817 = vmatpush3.msra.mxu1 %v319_v1 }
  0x97   :  { %1795 = vmatprep.mubr.f32.mxu0 %v2253_v52  ;;  %1818 = vmatprep.subr.mxu1 %v318_v2 }
  0x98   :  { %1819 = vmatpush3.msra.mxu1 %v318_v2 }
  0x99   :  { %1820 = vmatprep.subr.mxu1 %v317_v3 }
  0x9a   :  { %1796 = vmatmul.mubr.f32.gmra.mxu0 %v2256_v53  ;;  %1821 = vmatpush3.msra.mxu1 %v317_v3 }
  0x9b   :  { %1798 = vmatprep.mubr.f32.mxu0 %v2259_v54 }
  0x9e   :  { %1799 = vmatmul.mubr.f32.gmra.mxu0 %v2262_v55 }
  0x9f   :  { %1801 = vmatprep.mubr.f32.mxu0 %v2265_v56 }
  0xa2   :  { %1802 = vmatmul.mubr.f32.gmra.mxu0 %v2268_v57 }
  0xa3   :  { %1804 = vmatprep.mubr.f32.mxu0 %v2271_v58 }
  0xa6   :  { %1805 = vmatmul.mubr.f32.gmra.mxu0 %v2274_v59 }
  0xa7   :  { %1807 = vmatprep.mubr.f32.mxu0 %v2277_v60 }
  0xaa   :  { %1808 = vmatmul.mubr.f32.gmra.mxu0 %v2280_v61 }
  0xab   :  { %1914 = vmatprep.mubr.f32.mxu0 %v135_v47 }
 0x14e   :  { %v1788_v5 = vpop.f32.mrf.mxu0 }
 0x14f   :  { %v2286_v6 = vadd.f32 %v1788_v5, %v1528_v4 }
 0x150   :  { %v238_v7 = vpop.f32.mrf.mxu0 }
 0x151   :  { %v2288_v8 = vadd.f32 %v1528_v4, %v238_v7 }
 0x152   :  { %v1791_v9 = vpop.f32.mrf.mxu0 }
 0x153   :  { %2043 = vtanh.f32 %v2288_v8  ;;  %v2292_v10 = vadd.f32 %v1791_v9, %v1528_v4 }
 0x154   :  { %2045 = vtanh.f32 %v2286_v6  ;;  %v248_v11 = vpop.f32.mrf.mxu0 }
 0x155   :  { %v2294_v13 = vadd.f32 %v1528_v4, %v248_v11 }
 0x156   :  { %v1794_v12 = vpop.f32.mrf.mxu0 }
 0x157   :  { %2047 = vtanh.f32 %v2294_v13  ;;  %v2297_v14 = vadd.f32 %v1794_v12, %v1528_v4 }
 0x158   :  { %2049 = vtanh.f32 %v2292_v10  ;;  %v258_v16 = vpop.f32.mrf.mxu0 }
 0x159   :  { %v2300_v15 = vadd.f32 %v1528_v4, %v258_v16  ;;  %2051 = vtanh.f32 %v2297_v14 }
 0x15a   :  { %v1797_v17 = vpop.f32.mrf.mxu0 }
 0x15b   :  { %2053 = vtanh.f32 %v2300_v15  ;;  %v2304_v19 = vadd.f32 %v1797_v17, %v1528_v4 }
 0x15c   :  { %v268_v20 = vpop.f32.mrf.mxu0 }
 0x15d   :  { %v2306_v18 = vadd.f32 %v1528_v4, %v268_v20  ;;  %2055 = vtanh.f32 %v2304_v19 }
 0x15e   :  { %v1800_v22 = vpop.f32.mrf.mxu0 }
 0x15f   :  { %2057 = vtanh.f32 %v2306_v18  ;;  %v2310_v23 = vadd.f32 %v1800_v22, %v1528_v4 }
 0x160   :  { %v2044_v25 = vpop.eup %2043  ;;  %v278_v21 = vpop.f32.mrf.mxu0 }
 0x161   :  { %v2046_v26 = vpop.eup %2045  ;;  %v2312_v28 = vadd.f32 %v1528_v4, %v278_v21  ;;  %1822 = vmatprep.mubr.msk.f32.mxu1 %vm339_vm1, %v2044_v25  ;;  %2059 = vtanh.f32 %v2310_v23 }
 0x162   :  { %v1803_v24 = vpop.f32.mrf.mxu0  ;;  %1823 = vmatmul.mubr.msk.f32.vlgmr.msra.gmra.mxu1 %vm339_vm1, %v2046_v26 }
 0x163   :  { %2061 = vtanh.f32 %v2312_v28  ;;  %v2318_v29 = vadd.f32 %v1803_v24, %v1528_v4 }
 0x164   :  { %v2048_v31 = vpop.eup %2047  ;;  %v288_v27 = vpop.f32.mrf.mxu0 }
 0x165   :  { %v2050_v32 = vpop.eup %2049  ;;  %v2320_v34 = vadd.f32 %v1528_v4, %v288_v27  ;;  %1825 = vmatprep.mubr.msk.f32.mxu1 %vm339_vm1, %v2048_v31  ;;  %2063 = vtanh.f32 %v2318_v29 }
 0x166   :  { %v1806_v30 = vpop.f32.mrf.mxu0  ;;  %1826 = vmatmul.mubr.msk.f32.gmra.mxu1 %vm339_vm1, %v2050_v32  ;;  %v2052_v35 = vpop.eup %2051  ;;  %v648_v32 = vld [vmem:[#allocation5 + $0x130] sm:$0xff] }
 0x167   :  { %2065 = vtanh.f32 %v2320_v34  ;;  %v2326_v37 = vadd.f32 %v1806_v30, %v1528_v4  ;;  %v654_v30 = vld [vmem:[#allocation5 + $0x160] sm:$0xf]  ;;  %1882 = vmatprep.subr.mxu0 %v648_v32 }
 0x168   :  { %v2054_v33 = vpop.eup %2053  ;;  %v298_v38 = vpop.f32.mrf.mxu0  ;;  %1846 = vmatprep.subr.msk.mxu1 %vm388_vm0, %v654_v30  ;;  %1883 = vmatpush3.msra.mxu0 %v648_v32 }
 0x169   :  { %v2328_v40 = vadd.f32 %v1528_v4, %v298_v38  ;;  %1828 = vmatprep.mubr.msk.f32.mxu1 %vm339_vm1, %v2054_v33  ;;  %2067 = vtanh.f32 %v2326_v37  ;;  %v653_v33 = vld [vmem:[#allocation5 + $0x158] sm:$0xff]  ;;  %1847 = vmatpush3.msk.msra.mxu1 %vm388_vm0, %v654_v30  ;;  %v646_v38 = vld [vmem:[#allocation5 + $0x120] sm:$0xff] }
 0x16a   :  { %v1809_v36 = vpop.f32.mrf.mxu0  ;;  %1829 = vmatmul.mubr.msk.f32.gmra.mxu1 %vm339_vm1, %v2052_v35  ;;  %v2056_v41 = vpop.eup %2055  ;;  %v647_v35 = vld [vmem:[#allocation5 + $0x128] sm:$0xff]  ;;  %1848 = vmatprep.subr.mxu1 %v653_v33 }
 0x16b   :  { %2069 = vtanh.f32 %v2328_v40  ;;  %v2334_v43 = vadd.f32 %v1809_v36, %v1528_v4  ;;  %v652_v36 = vld [vmem:[#allocation5 + $0x150] sm:$0xff]  ;;  %1884 = vmatprep.subr.mxu0 %v647_v35  ;;  %1849 = vmatpush3.msra.mxu1 %v653_v33 }
 0x16c   :  { %v2058_v39 = vpop.eup %2057  ;;  %v308_v45 = vpop.f32.mrf.mxu0  ;;  %1885 = vmatpush3.msra.mxu0 %v647_v35  ;;  %1850 = vmatprep.subr.mxu1 %v652_v36 }
 0x16d   :  { %v2336_v46 = vadd.f32 %v1528_v4, %v308_v45  ;;  %1831 = vmatprep.mubr.msk.f32.mxu1 %vm339_vm1, %v2058_v39  ;;  %2071 = vtanh.f32 %v2334_v43  ;;  %v651_v39 = vld [vmem:[#allocation5 + $0x148] sm:$0xff]  ;;  %1886 = vmatprep.subr.mxu0 %v646_v38  ;;  %v644_v45 = vld [vmem:[#allocation5 + $0x110] sm:$0xff] }
 0x16e   :  { %1832 = vmatmul.mubr.msk.f32.gmra.mxu1 %vm339_vm1, %v2056_v41  ;;  %v2060_v42 = vpop.eup %2059  ;;  %v645_v41 = vld [vmem:[#allocation5 + $0x118] sm:$0xff]  ;;  %1887 = vmatpush3.msra.mxu0 %v646_v38 }
 0x16f   :  { %2073 = vtanh.f32 %v2336_v46  ;;  %1851 = vmatpush3.msra.mxu1 %v652_v36  ;;  %1888 = vmatprep.subr.mxu0 %v645_v41 }
 0x170   :  { %v2062_v47 = vpop.eup %2061  ;;  %1852 = vmatprep.subr.mxu1 %v651_v39  ;;  %1889 = vmatpush3.msra.mxu0 %v645_v41 }
 0x171   :  { %1834 = vmatprep.mubr.msk.f32.mxu1 %vm339_vm1, %v2062_v47  ;;  %v643_v47 = vld [vmem:[#allocation5 + $0x108] sm:$0xff]  ;;  %1853 = vmatpush3.msra.mxu1 %v651_v39 }
 0x172   :  { %1835 = vmatmul.mubr.msk.f32.gmra.mxu1 %vm339_vm1, %v2060_v42  ;;  %v2064_v62 = vpop.eup %2063  ;;  %v650_v42 = vld [vmem:[#allocation5 + $0x140] sm:$0xff]  ;;  %1890 = vmatprep.subr.mxu0 %v644_v45 }
 0x173   :  { %1854 = vmatprep.subr.mxu1 %v650_v42  ;;  %1891 = vmatpush3.msra.mxu0 %v644_v45 }
 0x174   :  { %v2066_v63 = vpop.eup %2065  ;;  %1855 = vmatpush3.msra.mxu1 %v650_v42  ;;  %1892 = vmatprep.subr.mxu0 %v643_v47  ;;  %v1071_v42 = vld [vmem:[#allocation5 + $0x1a0] sm:$0xff] }
 0x175   :  { %1837 = vmatprep.mubr.msk.f32.mxu1 %vm339_vm1, %v2066_v63  ;;  %v642_v63 = vld [vmem:[#allocation5 + $0x100] sm:$0xff]  ;;  %1893 = vmatpush3.msra.mxu0 %v643_v47 }
 0x176   :  { %1838 = vmatmul.mubr.msk.f32.gmra.mxu1 %vm339_vm1, %v2064_v62  ;;  %v2068_v0 = vpop.eup %2067  ;;  %v649_v62 = vld [vmem:[#allocation5 + $0x138] sm:$0xff]  ;;  %1894 = vmatprep.subr.mxu0 %v642_v63 }
 0x177   :  { %1856 = vmatprep.subr.mxu1 %v649_v62  ;;  %1895 = vmatpush3.msra.mxu0 %v642_v63 }
 0x178   :  { %v2070_v1 = vpop.eup %2069  ;;  %1857 = vmatpush3.msra.mxu1 %v649_v62  ;;  %v1070_v62 = vld [vmem:[#allocation5 + $0x198] sm:$0xff] }
 0x179   :  { %1840 = vmatprep.mubr.msk.f32.mxu1 %vm339_vm1, %v2070_v1  ;;  %v640_v1 = vld [vmem:[#allocation5 + $0xf0] sm:$0xff] }
 0x17a   :  { %1841 = vmatmul.mubr.msk.f32.gmra.mxu1 %vm339_vm1, %v2068_v0  ;;  %v2072_v2 = vpop.eup %2071  ;;  %v641_v0 = vld [vmem:[#allocation5 + $0xf8] sm:$0xff] }
 0x17b   :  { %1896 = vmatprep.subr.mxu0 %v641_v0 }
 0x17c   :  { %v2074_v3 = vpop.eup %2073  ;;  %1897 = vmatpush3.msra.mxu0 %v641_v0  ;;  %v1069_v0 = vld [vmem:[#allocation5 + $0x190] sm:$0xff] }
 0x17d   :  { %1843 = vmatprep.mubr.msk.f32.mxu1 %vm339_vm1, %v2074_v3  ;;  %1898 = vmatprep.subr.mxu0 %v640_v1  ;;  %v638_v3 = vld [vmem:[#allocation5 + $0xe0] sm:$0xff] }
 0x17e   :  { %1844 = vmatmul.mubr.msk.f32.gmra.mxu1 %vm339_vm1, %v2072_v2  ;;  %v639_v2 = vld [vmem:[#allocation5 + $0xe8] sm:$0xff]  ;;  %1899 = vmatpush3.msra.mxu0 %v640_v1 }
 0x17f   :  { %1900 = vmatprep.subr.mxu0 %v639_v2 }
 0x180   :  { %1901 = vmatpush3.msra.mxu0 %v639_v2  ;;  %v1068_v2 = vld [vmem:[#allocation5 + $0x188] sm:$0xff] }
 0x181   :  { %1902 = vmatprep.subr.mxu0 %v638_v3 }
 0x182   :  { %1903 = vmatpush3.msra.mxu0 %v638_v3 }
 0x222   :  { %v1824_v4 = vpop.f32.mrf.mxu1 }
 0x224   :  { %v458_v5 = vpop.f32.mrf.mxu1 }
 0x225   :  { %553 = vrot.lane.b32.xlu0 %v458_v5, %s2177_s0  ;;  %v636_v5 = vld [vmem:[#allocation5 + $0xd0] sm:$0xff] }
 0x226   :  { %v1827_v7 = vpop.f32.mrf.mxu1 }
 0x228   :  { %v468_v9 = vpop.f32.mrf.mxu1 }
 0x229   :  { %555 = vrot.lane.b32.xlu0 %v1824_v4, %s2177_s0  ;;  %557 = vrot.lane.b32.xlu1 %v468_v9, %s2177_s0  ;;  %v637_v4 = vld [vmem:[#allocation5 + $0xd8] sm:$0xff]  ;;  %v634_v9 = vld [vmem:[#allocation5 + $0xc0] sm:$0xff] }
 0x22a   :  { %v1830_v11 = vpop.f32.mrf.mxu1  ;;  %1904 = vmatprep.subr.mxu0 %v637_v4 }
 0x22b   :  { %1905 = vmatpush3.msra.mxu0 %v637_v4  ;;  %v1067_v4 = vld [vmem:[#allocation5 + $0x180] sm:$0xff] }
 0x22c   :  { %v478_v12 = vpop.f32.mrf.mxu1  ;;  %1906 = vmatprep.subr.mxu0 %v636_v5 }
 0x22d   :  { %559 = vrot.lane.b32.xlu1 %v1827_v7, %s2177_s0  ;;  %561 = vrot.lane.b32.xlu0 %v478_v12, %s2177_s0  ;;  %v635_v7 = vld [vmem:[#allocation5 + $0xc8] sm:$0xff] }
 0x22e   :  { %v1833_v16 = vpop.f32.mrf.mxu1  ;;  %1907 = vmatpush3.msra.mxu0 %v636_v5 }
 0x22f   :  { %1908 = vmatprep.subr.mxu0 %v635_v7 }
 0x230   :  { %v488_v17 = vpop.f32.mrf.mxu1  ;;  %1909 = vmatpush3.msra.mxu0 %v635_v7 }
 0x231   :  { %563 = vrot.lane.b32.xlu1 %v1830_v11, %s2177_s0  ;;  %565 = vrot.lane.b32.xlu0 %v488_v17, %s2177_s0 }
 0x232   :  { %v1836_v20 = vpop.f32.mrf.mxu1  ;;  %1910 = vmatprep.subr.mxu0 %v634_v9 }
 0x233   :  { %1911 = vmatpush3.msra.mxu0 %v634_v9 }
 0x234   :  { %v498_v22 = vpop.f32.mrf.mxu1 }
 0x235   :  { %567 = vrot.lane.b32.xlu1 %v1833_v16, %s2177_s0  ;;  %569 = vrot.lane.b32.xlu0 %v498_v22, %s2177_s0 }
 0x236   :  { %v1839_v25 = vpop.f32.mrf.mxu1 }
 0x238   :  { %v508_v21 = vpop.f32.mrf.mxu1 }
 0x239   :  { %571 = vrot.lane.b32.xlu1 %v1836_v20, %s2177_s0  ;;  %573 = vrot.lane.b32.xlu0 %v508_v21, %s2177_s0  ;;  %v633_v20 = vld [vmem:[#allocation5 + $0xb8] sm:$0xff] }
 0x23a   :  { %v1842_v26 = vpop.f32.mrf.mxu1  ;;  %1912 = vmatprep.subr.mxu0 %v633_v20 }
 0x23b   :  { %1913 = vmatpush3.msra.mxu0 %v633_v20 }
 0x23c   :  { %v518_v24 = vpop.f32.mrf.mxu1  ;;  %1915 = vmatmul.mubr.f32.vlgmr.msra.gmra.mxu0 %v2239_v44 }
 0x23d   :  { %575 = vrot.lane.b32.xlu1 %v1839_v25, %s2177_s0  ;;  %577 = vrot.lane.b32.xlu0 %v518_v24, %s2177_s0 }
 0x23e   :  { %v1845_v31 = vpop.f32.mrf.mxu1  ;;  %1917 = vmatprep.mubr.f32.mxu0 %v2241_v48 }
 0x240   :  { %v528_v27 = vpop.f32.mrf.mxu1  ;;  %1918 = vmatmul.mubr.f32.gmra.mxu0 %v2244_v49 }
 0x241   :  { %579 = vrot.lane.b32.xlu1 %v1842_v26, %s2177_s0  ;;  %581 = vrot.lane.b32.xlu0 %v528_v27, %s2177_s0 }
 0x242   :  { %1920 = vmatprep.mubr.f32.mxu0 %v2247_v50 }
 0x244   :  { %1921 = vmatmul.mubr.f32.gmra.mxu0 %v2250_v51 }
 0x245   :  { %583 = vrot.lane.b32.xlu1 %v1845_v31, %s2177_s0  ;;  %1923 = vmatprep.mubr.f32.mxu0 %v2253_v52 }
 0x248   :  { %1924 = vmatmul.mubr.f32.gmra.mxu0 %v2256_v53 }
 0x249   :  { %1926 = vmatprep.mubr.f32.mxu0 %v2259_v54 }
 0x24c   :  { %1927 = vmatmul.mubr.f32.gmra.mxu0 %v2262_v55 }
 0x24d   :  { %1929 = vmatprep.mubr.f32.mxu0 %v2265_v56 }
 0x250   :  { %1930 = vmatmul.mubr.f32.gmra.mxu0 %v2268_v57 }
 0x251   :  { %1932 = vmatprep.mubr.f32.mxu0 %v2271_v58 }
 0x254   :  { %1933 = vmatmul.mubr.f32.gmra.mxu0 %v2274_v59 }
 0x255   :  { %1935 = vmatprep.mubr.f32.mxu0 %v2277_v60 }
 0x258   :  { %1936 = vmatmul.mubr.f32.gmra.mxu0 %v2280_v61 }
 0x297   :  { %v554_v11 = vpop.permute.xlu0 %553 }
 0x298   :  { %v601_v12 = vadd.f32 %v554_v11, %v2288_v8 }
 0x29a   :  { %2075 = vtanh.f32 %v601_v12 }
 0x29b   :  { %v556_v16 = vpop.permute.xlu0 %555  ;;  %v558_v17 = vpop.permute.xlu1 %557 }
 0x29c   :  { %v602_v22 = vadd.f32 %v556_v16, %v2286_v6  ;;  %v603_v25 = vadd.f32 %v558_v17, %v2294_v13 }
 0x29e   :  { %2077 = vtanh.f32 %v602_v22 }
 0x29f   :  { %2079 = vtanh.f32 %v603_v25  ;;  %v560_v21 = vpop.permute.xlu1 %559  ;;  %v562_v26 = vpop.permute.xlu0 %561 }
 0x2a0   :  { %v604_v8 = vadd.f32 %v560_v21, %v2292_v10  ;;  %v605_v24 = vadd.f32 %v562_v26, %v2300_v15  ;;  %v1066_v21 = vld [vmem:[#allocation5 + $0x178] sm:$0xff]  ;;  %v1065_v26 = vld [vmem:[#allocation5 + $0x170] sm:$0xff] }
 0x2a2   :  { %2081 = vtanh.f32 %v604_v8  ;;  %v1295_v8 = vld [vmem:[#allocation5 + $0x1f0] sm:$0xff] }
 0x2a3   :  { %2083 = vtanh.f32 %v605_v24  ;;  %v564_v6 = vpop.permute.xlu1 %563  ;;  %v566_v13 = vpop.permute.xlu0 %565  ;;  %v1294_v24 = vld [vmem:[#allocation5 + $0x1e8] sm:$0xff]  ;;  %1978 = vmatprep.subr.mxu0 %v1295_v8 }
 0x2a4   :  { %v606_v31 = vadd.f32 %v564_v6, %v2297_v14  ;;  %v607_v44 = vadd.f32 %v566_v13, %v2306_v18  ;;  %1979 = vmatpush3.msra.mxu0 %v1295_v8  ;;  %v1293_v6 = vld [vmem:[#allocation5 + $0x1e0] sm:$0xff]  ;;  %v2415_v13 = vld [vmem:[#allocation5 + $0x1d8] sm:$0xff] }
 0x2a5   :  { %1980 = vmatprep.subr.mxu0 %v1294_v24 }
 0x2a6   :  { %2085 = vtanh.f32 %v606_v31  ;;  %1981 = vmatpush3.msra.mxu0 %v1294_v24  ;;  %v2417_v31 = vld [vmem:[#allocation5 + $0x1d0] sm:$0xff] }
 0x2a7   :  { %v2076_v48 = vpop.eup %2075  ;;  %2087 = vtanh.f32 %v607_v44  ;;  %v568_v10 = vpop.permute.xlu1 %567  ;;  %1982 = vmatprep.subr.mxu0 %v1293_v6 }
 0x2a8   :  { %v570_v27 = vpop.permute.xlu0 %569  ;;  %v608_v49 = vadd.f32 %v568_v10, %v2304_v19  ;;  %671 = vrot.lane.b32.xlu0 %v2076_v48, %s2178_s1  ;;  %1983 = vmatpush3.msra.mxu0 %v1293_v6 }
 0x2a9   :  { %v609_v15 = vadd.f32 %v570_v27, %v2312_v28  ;;  %1984 = vmatprep.subr.mxu0 %v2415_v13 }
 0x2aa   :  { %2089 = vtanh.f32 %v608_v49  ;;  %1985 = vmatpush3.msra.mxu0 %v2415_v13 }
 0x2ab   :  { %v2078_v50 = vpop.eup %2077  ;;  %2091 = vtanh.f32 %v609_v15  ;;  %v572_v14 = vpop.permute.xlu1 %571  ;;  %1986 = vmatprep.subr.mxu0 %v2417_v31 }
 0x2ac   :  { %v574_v51 = vpop.permute.xlu0 %573  ;;  %v2080_v18 = vpop.eup %2079  ;;  %v610_v32 = vadd.f32 %v572_v14, %v2310_v23  ;;  %673 = vrot.lane.b32.xlu1 %v2078_v50, %s2178_s1  ;;  %1987 = vmatpush3.msra.mxu0 %v2417_v31 }
 0x2ad   :  { %v611_v52 = vadd.f32 %v574_v51, %v2320_v34  ;;  %675 = vrot.lane.b32.xlu0 %v2080_v18, %s2178_s1 }
 0x2ae   :  { %2093 = vtanh.f32 %v610_v32  ;;  %v2423_v32 = vld [vmem:[#allocation5 + $0x168] ss:$0 sm:$0xff] }
 0x2af   :  { %v2082_v19 = vpop.eup %2081  ;;  %2095 = vtanh.f32 %v611_v52  ;;  %v576_v53 = vpop.permute.xlu1 %575 }
 0x2b0   :  { %v578_v28 = vpop.permute.xlu0 %577  ;;  %v2084_v30 = vpop.eup %2083  ;;  %v612_v54 = vadd.f32 %v576_v53, %v2318_v29  ;;  %677 = vrot.lane.b32.xlu1 %v2082_v19, %s2178_s1 }
 0x2b1   :  { %v613_v23 = vadd.f32 %v578_v28, %v2328_v40  ;;  %679 = vrot.lane.b32.xlu0 %v2084_v30, %s2178_s1 }
 0x2b2   :  { %2097 = vtanh.f32 %v612_v54 }
 0x2b3   :  { %v2086_v34 = vpop.eup %2085  ;;  %2099 = vtanh.f32 %v613_v23  ;;  %v580_v55 = vpop.permute.xlu1 %579 }
 0x2b4   :  { %v582_v35 = vpop.permute.xlu0 %581  ;;  %v2088_v33 = vpop.eup %2087  ;;  %v614_v56 = vadd.f32 %v580_v55, %v2326_v37  ;;  %681 = vrot.lane.b32.xlu1 %v2086_v34, %s2178_s1 }
 0x2b5   :  { %v615_v29 = vadd.f32 %v582_v35, %v2336_v46  ;;  %683 = vrot.lane.b32.xlu0 %v2088_v33, %s2178_s1  ;;  %v1072_v46 = vld [vmem:[#allocation5 + $0x1a8] sm:$0xff] }
 0x2b6   :  { %2101 = vtanh.f32 %v614_v56  ;;  %1938 = vmatprep.subr.mxu1 %v1072_v46 }
 0x2b7   :  { %v2090_v40 = vpop.eup %2089  ;;  %2103 = vtanh.f32 %v615_v29  ;;  %v584_v57 = vpop.permute.xlu1 %583 }
 0x2b8   :  { %v2092_v38 = vpop.eup %2091  ;;  %v616_v58 = vadd.f32 %v584_v57, %v2334_v43  ;;  %685 = vrot.lane.b32.xlu1 %v2090_v40, %s2178_s1 }
 0x2b9   :  { %687 = vrot.lane.b32.xlu0 %v2092_v38, %s2178_s1 }
 0x2ba   :  { %2105 = vtanh.f32 %v616_v58 }
 0x2bb   :  { %v2094_v37 = vpop.eup %2093 }
 0x2bc   :  { %v2096_v36 = vpop.eup %2095  ;;  %689 = vrot.lane.b32.xlu1 %v2094_v37, %s2178_s1 }
 0x2bd   :  { %691 = vrot.lane.b32.xlu0 %v2096_v36, %s2178_s1 }
 0x2bf   :  { %v2098_v59 = vpop.eup %2097 }
 0x2c0   :  { %v2100_v60 = vpop.eup %2099  ;;  %693 = vrot.lane.b32.xlu1 %v2098_v59, %s2178_s1 }
 0x2c1   :  { %695 = vrot.lane.b32.xlu0 %v2100_v60, %s2178_s1 }
 0x2c3   :  { %v2102_v43 = vpop.eup %2101 }
 0x2c4   :  { %v2104_v41 = vpop.eup %2103  ;;  %697 = vrot.lane.b32.xlu1 %v2102_v43, %s2178_s1 }
 0x2c5   :  { %699 = vrot.lane.b32.xlu0 %v2104_v41, %s2178_s1 }
 0x2c7   :  { %v2106_v61 = vpop.eup %2105 }
 0x2c8   :  { %701 = vrot.lane.b32.xlu1 %v2106_v61, %s2178_s1 }
 0x2fc   :  { %v1916_v44 = vpop.f32.mrf.mxu0 }
 0x2fe   :  { %v949_v48 = vpop.f32.mrf.mxu0 }
 0x300   :  { %v1919_v10 = vpop.f32.mrf.mxu0 }
 0x302   :  { %v959_v27 = vpop.f32.mrf.mxu0 }
 0x304   :  { %v1922_v49 = vpop.f32.mrf.mxu0 }
 0x306   :  { %v969_v15 = vpop.f32.mrf.mxu0 }
 0x308   :  { %v1925_v50 = vpop.f32.mrf.mxu0 }
 0x30a   :  { %v979_v14 = vpop.f32.mrf.mxu0 }
 0x30c   :  { %v1928_v19 = vpop.f32.mrf.mxu0 }
 0x30e   :  { %v989_v55 = vpop.f32.mrf.mxu0 }
 0x310   :  { %v1931_v37 = vpop.f32.mrf.mxu0 }
 0x31a   :  { %v672_v39 = vpop.permute.xlu0 %671 }
 0x31b   :  { %1858 = vmatprep.mubr.msk.f32.mxu1 %vm339_vm1, %v672_v39 }
 0x31e   :  { %v674_v45 = vpop.permute.xlu1 %673 }
 0x31f   :  { %v676_v47 = vpop.permute.xlu0 %675  ;;  %1859 = vmatmul.mubr.msk.f32.vlgmr.msra.gmra.mxu1 %vm339_vm1, %v674_v45  ;;  %v999_v45 = vpop.f32.mrf.mxu0 }
 0x320   :  { %1861 = vmatprep.mubr.msk.f32.mxu1 %vm339_vm1, %v676_v47  ;;  %1939 = vmatpush3.msra.mxu1 %v1072_v46 }
 0x321   :  { %1940 = vmatprep.subr.mxu1 %v1071_v42 }
 0x322   :  { %v678_v63 = vpop.permute.xlu1 %677  ;;  %1941 = vmatpush3.msra.mxu1 %v1071_v42 }
 0x323   :  { %v680_v1 = vpop.permute.xlu0 %679  ;;  %1862 = vmatmul.mubr.msk.f32.gmra.mxu1 %vm339_vm1, %v678_v63  ;;  %1942 = vmatprep.subr.mxu1 %v1070_v62 }
 0x324   :  { %1864 = vmatprep.mubr.msk.f32.mxu1 %vm339_vm1, %v680_v1  ;;  %1943 = vmatpush3.msra.mxu1 %v1070_v62 }
 0x325   :  { %1944 = vmatprep.subr.mxu1 %v1069_v0 }
 0x326   :  { %v682_v3 = vpop.permute.xlu1 %681  ;;  %1945 = vmatpush3.msra.mxu1 %v1069_v0 }
 0x327   :  { %v684_v5 = vpop.permute.xlu0 %683  ;;  %1865 = vmatmul.mubr.msk.f32.gmra.mxu1 %vm339_vm1, %v682_v3  ;;  %1946 = vmatprep.subr.mxu1 %v1068_v2 }
 0x328   :  { %1867 = vmatprep.mubr.msk.f32.mxu1 %vm339_vm1, %v684_v5  ;;  %1947 = vmatpush3.msra.mxu1 %v1068_v2 }
 0x329   :  { %1948 = vmatprep.subr.mxu1 %v1067_v4 }
 0x32a   :  { %v686_v7 = vpop.permute.xlu1 %685  ;;  %1949 = vmatpush3.msra.mxu1 %v1067_v4  ;;  %v1934_v4 = vpop.f32.mrf.mxu0 }
 0x32b   :  { %v688_v9 = vpop.permute.xlu0 %687  ;;  %1868 = vmatmul.mubr.msk.f32.gmra.mxu1 %vm339_vm1, %v686_v7  ;;  %1950 = vmatprep.subr.mxu1 %v1066_v21 }
 0x32c   :  { %1870 = vmatprep.mubr.msk.f32.mxu1 %vm339_vm1, %v688_v9  ;;  %1951 = vmatpush3.msra.mxu1 %v1066_v21 }
 0x32d   :  { %1952 = vmatprep.subr.mxu1 %v1065_v26 }
 0x32e   :  { %v690_v11 = vpop.permute.xlu1 %689  ;;  %1953 = vmatpush3.msra.mxu1 %v1065_v26 }
 0x32f   :  { %v692_v12 = vpop.permute.xlu0 %691  ;;  %1871 = vmatmul.mubr.msk.f32.gmra.mxu1 %vm339_vm1, %v690_v11  ;;  %2018 = vmatprep.subr.mxu1 %v1295_v8 }
 0x330   :  { %1873 = vmatprep.mubr.msk.f32.mxu1 %vm339_vm1, %v692_v12 }
 0x332   :  { %v694_v16 = vpop.permute.xlu1 %693 }
 0x333   :  { %v696_v17 = vpop.permute.xlu0 %695  ;;  %1874 = vmatmul.mubr.msk.f32.gmra.mxu1 %vm339_vm1, %v694_v16 }
 0x334   :  { %1876 = vmatprep.mubr.msk.f32.mxu1 %vm339_vm1, %v696_v17 }
 0x336   :  { %v698_v20 = vpop.permute.xlu1 %697 }
 0x337   :  { %v700_v22 = vpop.permute.xlu0 %699  ;;  %1877 = vmatmul.mubr.msk.f32.gmra.mxu1 %vm339_vm1, %v698_v20 }
 0x338   :  { %1879 = vmatprep.mubr.msk.f32.mxu1 %vm339_vm1, %v700_v22  ;;  %v1009_v22 = vpop.f32.mrf.mxu0 }
 0x33a   :  { %v702_v25 = vpop.permute.xlu1 %701 }
 0x33b   :  { %1880 = vmatmul.mubr.msk.f32.gmra.mxu1 %vm339_vm1, %v702_v25 }
 0x3df   :  { %v1860_v51 = vpop.f32.mrf.mxu1 }
 0x3e0   :  { %v955_v18 = vadd.f32 %v1916_v44, %v1860_v51  ;;  %v1937_v44 = vpop.f32.mrf.mxu0 }
 0x3e1   :  { %v804_v52 = vpop.f32.mrf.mxu1 }
 0x3e2   :  { %v950_v53 = vadd.f32 %v949_v48, %v804_v52  ;;  %v1034_v28 = vadd.f32 %v2423_v32, %v955_v18  ;;  %v1019_v51 = vpop.f32.mrf.mxu0 }
 0x3e3   :  { %v1863_v30 = vpop.f32.mrf.mxu1 }
 0x3e4   :  { %v1033_v54 = vadd.f32 %v2423_v32, %v950_v53  ;;  %v965_v23 = vadd.f32 %v1919_v10, %v1863_v30  ;;  %v1050_v56 = vmax.f32 %v1034_v28, 0.0 }
 0x3e5   :  { %v814_v34 = vpop.f32.mrf.mxu1 }
 0x3e6   :  { %v1049_v35 = vmax.f32 %v1033_v54, 0.0  ;;  %v960_v33 = vadd.f32 %v959_v27, %v814_v34  ;;  %v1036_v29 = vadd.f32 %v2423_v32, %v965_v23  ;;  %v1290_v34 = vld [vmem:[#allocation5 + $0x1c8] sm:$0xff] }
 0x3e7   :  { %v1866_v40 = vpop.f32.mrf.mxu1  ;;  %1988 = vmatprep.subr.mxu0 %v1290_v34 }
 0x3e8   :  { %v1035_v57 = vadd.f32 %v2423_v32, %v960_v33  ;;  %v975_v38 = vadd.f32 %v1922_v49, %v1866_v40  ;;  %1954 = vmatprep.mubr.msk.f32.mxu1 %vm1078_vm2, %v1049_v35  ;;  %v1052_v59 = vmax.f32 %v1036_v29, 0.0  ;;  %1989 = vmatpush3.msra.mxu0 %v1290_v34  ;;  %v1564_v35 = vld [vmem:[#allocation5 + $0x1b0] ss:$0 sm:$0xff] }
 0x3e9   :  { %v824_v58 = vpop.f32.mrf.mxu1  ;;  %1955 = vmatmul.mubr.msk.f32.vlgmr.msra.gmra.mxu1 %vm1078_vm2, %v1050_v56 }
 0x3ea   :  { %v1051_v46 = vmax.f32 %v1035_v57, 0.0  ;;  %v970_v36 = vadd.f32 %v969_v15, %v824_v58  ;;  %2026 = vmatpush3.msra.mxu1 %v1295_v8  ;;  %v1038_v60 = vadd.f32 %v2423_v32, %v975_v38 }
 0x3eb   :  { %v1869_v43 = vpop.f32.mrf.mxu1  ;;  %2019 = vmatprep.subr.mxu1 %v1294_v24 }
 0x3ec   :  { %v1037_v41 = vadd.f32 %v2423_v32, %v970_v36  ;;  %v985_v61 = vadd.f32 %v1925_v50, %v1869_v43  ;;  %1957 = vmatprep.mubr.msk.f32.mxu1 %vm1078_vm2, %v1051_v46  ;;  %2027 = vmatpush3.msra.mxu1 %v1294_v24  ;;  %v1054_v62 = vmax.f32 %v1038_v60, 0.0 }
 0x3ed   :  { %v834_v39 = vpop.f32.mrf.mxu1  ;;  %1958 = vmatmul.mubr.msk.f32.gmra.mxu1 %vm1078_vm2, %v1052_v59  ;;  %2020 = vmatprep.subr.mxu1 %v1293_v6 }
 0x3ee   :  { %v1053_v42 = vmax.f32 %v1037_v41, 0.0  ;;  %v980_v47 = vadd.f32 %v979_v14, %v834_v39  ;;  %2028 = vmatpush3.msra.mxu1 %v1293_v6  ;;  %v1040_v63 = vadd.f32 %v2423_v32, %v985_v61 }
 0x3ef   :  { %v1872_v0 = vpop.f32.mrf.mxu1  ;;  %2021 = vmatprep.subr.mxu1 %v2415_v13 }
 0x3f0   :  { %v1039_v1 = vadd.f32 %v2423_v32, %v980_v47  ;;  %v995_v2 = vadd.f32 %v1928_v19, %v1872_v0  ;;  %1960 = vmatprep.mubr.msk.f32.mxu1 %vm1078_vm2, %v1053_v42  ;;  %2029 = vmatpush3.msra.mxu1 %v2415_v13  ;;  %v1056_v9 = vmax.f32 %v1040_v63, 0.0 }
 0x3f1   :  { %v844_v3 = vpop.f32.mrf.mxu1  ;;  %1961 = vmatmul.mubr.msk.f32.gmra.mxu1 %vm1078_vm2, %v1054_v62  ;;  %2022 = vmatprep.subr.mxu1 %v2417_v31 }
 0x3f2   :  { %v1055_v5 = vmax.f32 %v1039_v1, 0.0  ;;  %v990_v7 = vadd.f32 %v989_v55, %v844_v3  ;;  %2030 = vmatpush3.msra.mxu1 %v2417_v31  ;;  %v1042_v11 = vadd.f32 %v2423_v32, %v995_v2  ;;  %v1289_v55 = vld [vmem:[#allocation5 + $0x1c0] sm:$0xff] }
 0x3f3   :  { %v1875_v12 = vpop.f32.mrf.mxu1  ;;  %2023 = vmatprep.subr.mxu1 %v1290_v34  ;;  %1990 = vmatprep.subr.mxu0 %v1289_v55 }
 0x3f4   :  { %v1041_v16 = vadd.f32 %v2423_v32, %v990_v7  ;;  %v1005_v17 = vadd.f32 %v1931_v37, %v1875_v12  ;;  %1963 = vmatprep.mubr.msk.f32.mxu1 %vm1078_vm2, %v1055_v5  ;;  %v1058_v26 = vmax.f32 %v1042_v11, 0.0  ;;  %2031 = vmatpush3.msra.mxu1 %v1290_v34 }
 0x3f5   :  { %v854_v20 = vpop.f32.mrf.mxu1  ;;  %1964 = vmatmul.mubr.msk.f32.gmra.mxu1 %vm1078_vm2, %v1056_v9  ;;  %2024 = vmatprep.subr.mxu1 %v1289_v55 }
 0x3f6   :  { %v1057_v25 = vmax.f32 %v1041_v16, 0.0  ;;  %v1000_v21 = vadd.f32 %v999_v45, %v854_v20  ;;  %v1044_v8 = vadd.f32 %v2423_v32, %v1005_v17  ;;  %1991 = vmatpush3.msra.mxu0 %v1289_v55  ;;  %2032 = vmatpush3.msra.mxu1 %v1289_v55 }
 0x3f7   :  { %v1878_v24 = vpop.f32.mrf.mxu1 }
 0x3f8   :  { %v1043_v6 = vadd.f32 %v2423_v32, %v1000_v21  ;;  %v1015_v13 = vadd.f32 %v1934_v4, %v1878_v24  ;;  %1966 = vmatprep.mubr.msk.f32.mxu1 %vm1078_vm2, %v1057_v25  ;;  %v1060_v27 = vmax.f32 %v1044_v8, 0.0 }
 0x3f9   :  { %v864_v31 = vpop.f32.mrf.mxu1  ;;  %1967 = vmatmul.mubr.msk.f32.gmra.mxu1 %vm1078_vm2, %v1058_v26 }
 0x3fa   :  { %v1059_v48 = vmax.f32 %v1043_v6, 0.0  ;;  %v1010_v10 = vadd.f32 %v1009_v22, %v864_v31  ;;  %v1046_v49 = vadd.f32 %v2423_v32, %v1015_v13 }
 0x3fb   :  { %v1881_v15 = vpop.f32.mrf.mxu1 }
 0x3fc   :  { %v1045_v50 = vadd.f32 %v2423_v32, %v1010_v10  ;;  %v1025_v14 = vadd.f32 %v1937_v44, %v1881_v15  ;;  %1969 = vmatprep.mubr.msk.f32.mxu1 %vm1078_vm2, %v1059_v48  ;;  %v1062_v53 = vmax.f32 %v1046_v49, 0.0  ;;  %v1581_v15 = vld [vmem:[#allocation5 + $0x1f8] ss:$0 sm:$0xff] }
 0x3fd   :  { %v874_v18 = vpop.f32.mrf.mxu1  ;;  %1970 = vmatmul.mubr.msk.f32.gmra.mxu1 %vm1078_vm2, %v1060_v27 }
 0x3fe   :  { %v1061_v52 = vmax.f32 %v1045_v50, 0.0  ;;  %v1020_v19 = vadd.f32 %v1019_v51, %v874_v18  ;;  %v1048_v28 = vadd.f32 %v2423_v32, %v1025_v14 }
 0x400   :  { %v1047_v30 = vadd.f32 %v2423_v32, %v1020_v19  ;;  %1972 = vmatprep.mubr.msk.f32.mxu1 %vm1078_vm2, %v1061_v52  ;;  %v1064_v23 = vmax.f32 %v1048_v28, 0.0  ;;  %v1288_v32 = vld [vmem:[#allocation5 + $0x1b8] sm:$0xff] }
 0x401   :  { %1973 = vmatmul.mubr.msk.f32.gmra.mxu1 %vm1078_vm2, %v1062_v53  ;;  %1992 = vmatprep.subr.mxu0 %v1288_v32 }
 0x402   :  { %v1063_v54 = vmax.f32 %v1047_v30, 0.0  ;;  %2025 = vmatprep.subr.mxu1 %v1288_v32  ;;  %1993 = vmatpush3.msra.mxu0 %v1288_v32 }
 0x403   :  { %2033 = vmatpush3.msra.mxu1 %v1288_v32 }
 0x404   :  { %1975 = vmatprep.mubr.msk.f32.mxu1 %vm1078_vm2, %v1063_v54 }
 0x405   :  { %1976 = vmatmul.mubr.msk.f32.gmra.mxu1 %vm1078_vm2, %v1064_v23 }
 0x4a9   :  { %v1956_v33 = vpop.f32.mrf.mxu1 }
 0x4aa   :  { %v1199_v56 = vadd.f32 %v1956_v33, %v1564_v35 }
 0x4ab   :  { %v1193_v29 = vpop.f32.mrf.mxu1 }
 0x4ac   :  { %v1194_v40 = vadd.f32 %v1564_v35, %v1193_v29  ;;  %v1273_v58 = vmax.f32 %v1199_v56, 0.0 }
 0x4ad   :  { %v1959_v57 = vpop.f32.mrf.mxu1 }
 0x4ae   :  { %v1272_v38 = vmax.f32 %v1194_v40, 0.0  ;;  %v1209_v37 = vadd.f32 %v1959_v57, %v1564_v35 }
 0x4af   :  { %v1203_v46 = vpop.f32.mrf.mxu1 }
 0x4b0   :  { %v1204_v36 = vadd.f32 %v1564_v35, %v1203_v46  ;;  %1994 = vmatprep.mubr.msk.f32.mxu0 %vm1078_vm2, %v1272_v38  ;;  %v1275_v43 = vmax.f32 %v1209_v37, 0.0 }
 0x4b1   :  { %v1962_v59 = vpop.f32.mrf.mxu1  ;;  %1995 = vmatmul.mubr.msk.f32.vlgmr.msra.gmra.mxu0 %vm1078_vm2, %v1273_v58 }
 0x4b2   :  { %v1274_v60 = vmax.f32 %v1204_v36, 0.0  ;;  %v1219_v41 = vadd.f32 %v1962_v59, %v1564_v35 }
 0x4b3   :  { %v1213_v61 = vpop.f32.mrf.mxu1 }
 0x4b4   :  { %v1214_v39 = vadd.f32 %v1564_v35, %v1213_v61  ;;  %1997 = vmatprep.mubr.msk.f32.mxu0 %vm1078_vm2, %v1274_v60  ;;  %v1277_v47 = vmax.f32 %v1219_v41, 0.0 }
 0x4b5   :  { %v1965_v45 = vpop.f32.mrf.mxu1  ;;  %1998 = vmatmul.mubr.msk.f32.gmra.mxu0 %vm1078_vm2, %v1275_v43 }
 0x4b6   :  { %v1276_v42 = vmax.f32 %v1214_v39, 0.0  ;;  %v1229_v62 = vadd.f32 %v1965_v45, %v1564_v35 }
 0x4b7   :  { %v1223_v63 = vpop.f32.mrf.mxu1 }
 0x4b8   :  { %v1224_v0 = vadd.f32 %v1564_v35, %v1223_v63  ;;  %2000 = vmatprep.mubr.msk.f32.mxu0 %vm1078_vm2, %v1276_v42  ;;  %v1279_v3 = vmax.f32 %v1229_v62, 0.0 }
 0x4b9   :  { %v1968_v1 = vpop.f32.mrf.mxu1  ;;  %2001 = vmatmul.mubr.msk.f32.gmra.mxu0 %vm1078_vm2, %v1277_v47 }
 0x4ba   :  { %v1278_v2 = vmax.f32 %v1224_v0, 0.0  ;;  %v1239_v4 = vadd.f32 %v1968_v1, %v1564_v35 }
 0x4bb   :  { %v1233_v5 = vpop.f32.mrf.mxu1 }
 0x4bc   :  { %v1234_v7 = vadd.f32 %v1564_v35, %v1233_v5  ;;  %2003 = vmatprep.mubr.msk.f32.mxu0 %vm1078_vm2, %v1278_v2  ;;  %v1281_v12 = vmax.f32 %v1239_v4, 0.0 }
 0x4bd   :  { %v1971_v9 = vpop.f32.mrf.mxu1  ;;  %2004 = vmatmul.mubr.msk.f32.gmra.mxu0 %vm1078_vm2, %v1279_v3 }
 0x4be   :  { %v1280_v11 = vmax.f32 %v1234_v7, 0.0  ;;  %v1249_v16 = vadd.f32 %v1971_v9, %v1564_v35 }
 0x4bf   :  { %v1243_v17 = vpop.f32.mrf.mxu1 }
 0x4c0   :  { %v1244_v20 = vadd.f32 %v1564_v35, %v1243_v17  ;;  %2006 = vmatprep.mubr.msk.f32.mxu0 %vm1078_vm2, %v1280_v11  ;;  %v1283_v21 = vmax.f32 %v1249_v16, 0.0 }
 0x4c1   :  { %v1974_v22 = vpop.f32.mrf.mxu1  ;;  %2007 = vmatmul.mubr.msk.f32.gmra.mxu0 %vm1078_vm2, %v1281_v12 }
 0x4c2   :  { %v1282_v25 = vmax.f32 %v1244_v20, 0.0  ;;  %v1259_v26 = vadd.f32 %v1974_v22, %v1564_v35 }
 0x4c3   :  { %v1253_v8 = vpop.f32.mrf.mxu1 }
 0x4c4   :  { %v1254_v24 = vadd.f32 %v1564_v35, %v1253_v8  ;;  %2009 = vmatprep.mubr.msk.f32.mxu0 %vm1078_vm2, %v1282_v25  ;;  %v1285_v31 = vmax.f32 %v1259_v26, 0.0 }
 0x4c5   :  { %v1977_v6 = vpop.f32.mrf.mxu1  ;;  %2010 = vmatmul.mubr.msk.f32.gmra.mxu0 %vm1078_vm2, %v1283_v21 }
 0x4c6   :  { %v1284_v13 = vmax.f32 %v1254_v24, 0.0  ;;  %v1269_v44 = vadd.f32 %v1977_v6, %v1564_v35 }
 0x4c7   :  { %v1263_v48 = vpop.f32.mrf.mxu1 }
 0x4c8   :  { %v1264_v10 = vadd.f32 %v1564_v35, %v1263_v48  ;;  %2012 = vmatprep.mubr.msk.f32.mxu1 %vm1078_vm2, %v1284_v13  ;;  %v1287_v49 = vmax.f32 %v1269_v44, 0.0 }
 0x4c9   :  { %2013 = vmatmul.mubr.msk.f32.vlgmr.msra.gmra.mxu1 %vm1078_vm2, %v1285_v31 }
 0x4ca   :  { %v1286_v27 = vmax.f32 %v1264_v10, 0.0 }
 0x4cc   :  { %2015 = vmatprep.mubr.msk.f32.mxu1 %vm1078_vm2, %v1286_v27 }
 0x4cd   :  { %2016 = vmatmul.mubr.msk.f32.gmra.mxu1 %vm1078_vm2, %v1287_v49 }
 0x571   :  { %v1996_v50 = vpop.f32.mrf.mxu0 }
 0x572   :  { %v1421_v14 = vadd.f32 %v1996_v50, %v1581_v15 }
 0x573   :  { %v1415_v51 = vpop.f32.mrf.mxu0 }
 0x574   :  { %1495 = vst [vmem:[#allocation7 + $0x8] sm:$0xff] %v1421_v14  ;;  %v1416_v18 = vadd.f32 %v1581_v15, %v1415_v51 }
 0x575   :  { %v1999_v52 = vpop.f32.mrf.mxu0 }
 0x576   :  { %1494 = vst [vmem:[#allocation7] sm:$0xff] %v1416_v18  ;;  %v1431_v19 = vadd.f32 %v1999_v52, %v1581_v15 }
 0x577   :  { %v1425_v53 = vpop.f32.mrf.mxu0 }
 0x578   :  { %1497 = vst [vmem:[#allocation7 + $0x18] sm:$0xff] %v1431_v19  ;;  %v1426_v28 = vadd.f32 %v1581_v15, %v1425_v53 }
 0x579   :  { %v2002_v30 = vpop.f32.mrf.mxu0 }
 0x57a   :  { %1496 = vst [vmem:[#allocation7 + $0x10] sm:$0xff] %v1426_v28  ;;  %v1441_v54 = vadd.f32 %v2002_v30, %v1581_v15 }
 0x57b   :  { %v1435_v23 = vpop.f32.mrf.mxu0 }
 0x57c   :  { %1499 = vst [vmem:[#allocation7 + $0x28] sm:$0xff] %v1441_v54  ;;  %v1436_v34 = vadd.f32 %v1581_v15, %v1435_v23 }
 0x57d   :  { %v2005_v55 = vpop.f32.mrf.mxu0 }
 0x57e   :  { %1498 = vst [vmem:[#allocation7 + $0x20] sm:$0xff] %v1436_v34  ;;  %v1451_v32 = vadd.f32 %v2005_v55, %v1581_v15 }
 0x57f   :  { %v1445_v35 = vpop.f32.mrf.mxu0 }
 0x580   :  { %1501 = vst [vmem:[#allocation7 + $0x38] sm:$0xff] %v1451_v32  ;;  %v1446_v33 = vadd.f32 %v1581_v15, %v1445_v35 }
 0x581   :  { %v2008_v56 = vpop.f32.mrf.mxu0 }
 0x582   :  { %1500 = vst [vmem:[#allocation7 + $0x30] sm:$0xff] %v1446_v33  ;;  %v1461_v29 = vadd.f32 %v2008_v56, %v1581_v15 }
 0x583   :  { %v1455_v40 = vpop.f32.mrf.mxu0 }
 0x584   :  { %1503 = vst [vmem:[#allocation7 + $0x48] sm:$0xff] %v1461_v29  ;;  %v1456_v57 = vadd.f32 %v1581_v15, %v1455_v40 }
 0x585   :  { %v2011_v38 = vpop.f32.mrf.mxu0 }
 0x586   :  { %1502 = vst [vmem:[#allocation7 + $0x40] sm:$0xff] %v1456_v57  ;;  %v1471_v58 = vadd.f32 %v2011_v38, %v1581_v15 }
 0x587   :  { %v1465_v37 = vpop.f32.mrf.mxu0 }
 0x588   :  { %1505 = vst [vmem:[#allocation7 + $0x58] sm:$0xff] %v1471_v58  ;;  %v1466_v46 = vadd.f32 %v1581_v15, %v1465_v37 }
 0x589   :  { %v2014_v36 = vpop.f32.mrf.mxu1 }
 0x58a   :  { %1504 = vst [vmem:[#allocation7 + $0x50] sm:$0xff] %v1466_v46  ;;  %v1481_v59 = vadd.f32 %v2014_v36, %v1581_v15 }
 0x58b   :  { %v1475_v60 = vpop.f32.mrf.mxu1 }
 0x58c   :  { %1507 = vst [vmem:[#allocation7 + $0x68] sm:$0xff] %v1481_v59  ;;  %v1476_v43 = vadd.f32 %v1581_v15, %v1475_v60 }
 0x58d   :  { %v2017_v41 = vpop.f32.mrf.mxu1 }
 0x58e   :  { %1506 = vst [vmem:[#allocation7 + $0x60] sm:$0xff] %v1476_v43  ;;  %v1491_v61 = vadd.f32 %v2017_v41, %v1581_v15 }
 0x58f   :  { %v1485_v39 = vpop.f32.mrf.mxu1 }
 0x590   :  { %1509 = vst [vmem:[#allocation7 + $0x78] sm:$0xff] %v1491_v61  ;;  %v1486_v45 = vadd.f32 %v1581_v15, %v1485_v39 }
 0x592   :  { %1508 = vst [vmem:[#allocation7 + $0x70] sm:$0xff] %v1486_v45 }
 0x593   :  { %2158 = shalt.err (!%p2155_p0)
}
 0x594   :  { %1521 = dma.vmem_to_hbm [thread:$0]  %s1516_s22, 2048, %s2485_s2, [#allocation4], %s2174_s12, %s2174_s12, %s2175_s13  }
 0x595   :  { %2171 = dma.done.wait [#allocation4], 2048  }
 0x596   :  { %2172 = vsyncadd [#allocation4], 4294965248 }
 0x597   :  { %1525 = vsyncpa [#allocation3], 1 }
 0x598   :  { %1526 = vsyncpa [#allocation6], 1 }
 0x599   :  { %1527 = vsyncpa [#allocation4], 1 }

</bundles_post_ra>
